<compile_context>
chip_gen: v7x
topology: tpu7x:2x2x1
jax: 0.10.0
libtpu: 0.0.40
codegen_flags: <defaults>
</compile_context>

<pallas_src>
import jax
import jax.numpy as jnp
import numpy as np
from jax.experimental import pallas as pl
from jax.experimental.pallas import tpu as pltpu


def _ceil_div(a, b):
    return -(-a // b)


def conv_transpose2d_pallas(x, w, b, *, stride, padding, compute_dtype=jnp.float32):
    """PyTorch nn.ConvTranspose2d forward (square kernel, symmetric stride/padding).

    x: (N, Cin, H, W), w: (Cin, Cout, K, K) [PyTorch ConvTranspose2d layout], b: (Cout,).
    Returns (N, Cout, H_out, W_out).

    Sub-pixel rewrite:
      y[n, co, a*s + r_h, bb*s + r_w] =
        b[co] + sum_{q_h,q_w,ci} W2[(r_h,r_w,co), ci, q_h, q_w] * x_pad[n, ci, hb0+a+q_h, wb0+bb+q_w]
    i.e. a single stride-1 correlation with s*s*Cout output channels, computed in the
    kernel as a short unrolled chain of (s*s*Cout, Cin) x (Cin, n_h_u*Wp) MXU matmuls on
    static lane-offset windows of the flattened padded image.
    """
    N, Cin, H, W = map(int, x.shape)
    Cin_w, Cout, K, K2 = map(int, w.shape)
    assert Cin_w == Cin and K2 == K
    s = int(stride)
    padding = int(padding)
    assert s >= 1 and padding >= 0

    H_out = (H - 1) * s - 2 * padding + K
    W_out = (W - 1) * s - 2 * padding + K
    assert H_out > 0 and W_out > 0

    # ---- per-residue (phase) bookkeeping; identical for H and W (square kernel) ----
    Tmax = _ceil_div(K, s)                        # taps per dim per output residue
    ub = [(r + padding) // s for r in range(s)]   # first input index per output residue
    ub_min = min(ub)
    d = [u - ub_min for u in ub]                  # per-residue extra shift (0 or 1)
    Ku = Tmax + max(d)                            # unified per-dim tap window size
    ih_base = ub_min - (Tmax - 1)                 # lowest input index any tap touches
    pad_lo = max(0, -ih_base)
    hb0 = ih_base + pad_lo                        # >= 0 (same value for width)
    n_h_u = _ceil_div(H_out, s)                   # uniform per-residue output rows
    n_w_u = _ceil_div(W_out, s)
    # High-side pads: legit reads stay in range; +1 extra row so the over-computed lane
    # columns (bb >= n_w_u, cropped later) that wrap into the next row also stay in-bounds.
    pad_h_hi = max(0, ih_base + (n_h_u - 1) + (Ku - 1) - (H - 1)) + 1
    pad_w_hi = max(0, ih_base + (n_w_u - 1) + (Ku - 1) - (W - 1))
    Hp = H + pad_lo + pad_h_hi
    Wp = W + pad_lo + pad_w_hi
    Lf = Hp * Wp                                  # flattened padded image length
    Lo = n_h_u * Wp                               # flattened (over-computed) output length
    Cout_t = s * s * Cout                         # phase-expanded output channels

    # ---- rearranged per-tap weights (tiny, wrapper side) ----
    # Zero-weight slots read in-bounds finite (padded) values, so 0 * value == 0.
    shifts, tap_mats = [], []
    for q_h in range(Ku):
        for q_w in range(Ku):
            mat = jnp.zeros((Cout_t, Cin), jnp.float32)
            used = False
            for r_h in range(s):
                j_h = (Tmax - 1) + d[r_h] - q_h
                kh = (r_h + padding) % s + j_h * s
                if j_h < 0 or kh < 0 or kh >= K:
                    continue
                for r_w in range(s):
                    j_w = (Tmax - 1) + d[r_w] - q_w
                    kw = (r_w + padding) % s + j_w * s
                    if j_w < 0 or kw < 0 or kw >= K:
                        continue
                    co0 = (r_h * s + r_w) * Cout
                    mat = mat.at[co0:co0 + Cout, :].set(
                        jnp.transpose(w[:, :, kh, kw]).astype(jnp.float32))
                    used = True
            if used:
                shifts.append(int((hb0 + q_h) * Wp + (hb0 + q_w)))
                tap_mats.append(mat)
    n_taps = len(shifts)
    assert n_taps >= 1
    shifts = tuple(shifts)
    w_stack = jnp.stack(tap_mats, axis=0).astype(compute_dtype)     # (n_taps, Cout_t, Cin)
    bias_t = jnp.tile(b.astype(jnp.float32), s * s).reshape(Cout_t, 1)

    # ---- padded, flattened input: the only wrapper-side data movement (~1x bytes) ----
    x_flat = jnp.pad(x.astype(compute_dtype),
                     ((0, 0), (0, 0), (pad_lo, pad_h_hi), (pad_lo, pad_w_hi))
                     ).reshape(N, Cin, Lf)

    # ---- grid: one step per nb-image sub-batch; whole images resident in VMEM per step ----
    # TODO(synk): add halo-tiled H blocking for images too large for whole-image VMEM residency.
    itemsize = jnp.dtype(compute_dtype).itemsize
    per_img = Cin * Lf * itemsize + Cout_t * Lo * 4
    nb = 1
    if N >= 4 and per_img < (1 << 21):
        for cand in range(min(N // 2, 16), 0, -1):   # keep >= 2 grid steps for megacore
            if N % cand == 0 and cand * per_img <= (4 << 20):
                nb = cand
                break
    num_steps = N // nb

    # ---- VMEM budget: double-buffered blocks + accumulator / tap-window temporaries ----
    step_bytes = nb * per_img + n_taps * Cout_t * Cin * itemsize + Cout_t * 4
    need = 2 * step_bytes + nb * Cout_t * Lo * 4 + Cin * Lo * itemsize
    try:
        vmem_cap = int(pltpu.get_tpu_info().vmem_capacity_bytes)
    except Exception:
        vmem_cap = 64 * 1024 * 1024               # v7x-safe assumption
    vmem_limit = int(min(max(2 * need, 16 * 1024 * 1024), (vmem_cap * 3) // 4))

    def kernel(w_ref, b_ref, x_ref, o_ref):
        bias_vec = b_ref[...]                                    # (Cout_t, 1)
        for bi in range(nb):                                     # static unroll
            img = x_ref[bi]                                      # (Cin, Lf) in VMEM
            acc = jnp.zeros((Cout_t, Lo), jnp.float32)
            for t in range(n_taps):                              # static unroll over taps
                win = img[:, shifts[t]:shifts[t] + Lo]           # static lane-offset window
                acc = acc + jnp.dot(w_ref[t], win,
                                    preferred_element_type=jnp.float32)
            o_ref[bi] = (acc + bias_vec).astype(o_ref.dtype)

    out = pl.pallas_call(
        kernel,
        out_shape=jax.ShapeDtypeStruct((N, Cout_t, Lo), jnp.float32),
        grid_spec=pltpu.PrefetchScalarGridSpec(
            num_scalar_prefetch=0,
            grid=(num_steps,),
            in_specs=[
                pl.BlockSpec((n_taps, Cout_t, Cin), lambda i: (0, 0, 0)),  # weights: resident
                pl.BlockSpec((Cout_t, 1), lambda i: (0, 0)),               # bias: resident
                pl.BlockSpec((nb, Cin, Lf), lambda i: (i, 0, 0)),          # images: streamed
            ],
            out_specs=pl.BlockSpec((nb, Cout_t, Lo), lambda i: (i, 0, 0)),  # lane-dense stores
        ),
        compiler_params=pltpu.CompilerParams(
            dimension_semantics=("parallel",),
            vmem_limit_bytes=vmem_limit),
    )(w_stack, bias_t, x_flat)

    # ---- pixel-shuffle back to NCHW: ONE reshape/transpose + crop (no strided scatters) ----
    y = out.reshape(N, s, s, Cout, n_h_u, Wp)[:, :, :, :, :, :n_w_u]
    y = jnp.transpose(y, (0, 3, 4, 1, 5, 2)).reshape(N, Cout, n_h_u * s, n_w_u * s)
    y = y[:, :, :H_out, :W_out]
    return y.astype(x.dtype)


def init_conv_transpose2d_separable(key, c_in, c_out, kernel_size, red_portion=0.5):
    """Deterministic parameter init matching the PyTorch module's shapes."""
    c_in_red = int(c_in * red_portion)
    c_out_red = int(c_out * red_portion)
    c_out_green = c_out - c_out_red
    k1, k2, k3, k4 = jax.random.split(key, 4)
    # weight layout is PyTorch ConvTranspose2d: (in_channels, out_channels, kH, kW)
    return {
        "w_red": 0.1 * jax.random.normal(k1, (c_in_red, c_out_red, kernel_size, kernel_size), jnp.float32),
        "b_red": 0.1 * jax.random.normal(k2, (c_out_red,), jnp.float32),
        "w_green": 0.1 * jax.random.normal(k3, (c_in, c_out_green, kernel_size, kernel_size), jnp.float32),
        "b_green": 0.1 * jax.random.normal(k4, (c_out_green,), jnp.float32),
        "c_in_red": c_in_red,
    }


def conv_transpose2d_separable_forward(params, x, *, stride, padding, compute_dtype=jnp.float32):
    """Red + green ConvTranspose2d branches fused into ONE Pallas call.

    Red output channels only see the first c_in_red input channels, so the red weights are
    zero-padded over the remaining input channels and concatenated with the green weights
    along Cout (matches torch.cat((y_red, y_green), dim=1)).
    """
    c_in_red = params["c_in_red"]
    w_red, b_red = params["w_red"], params["b_red"]
    w_green, b_green = params["w_green"], params["b_green"]
    c_in = x.shape[1]
    c_out_red, K = w_red.shape[1], w_red.shape[2]

    w_red_full = jnp.zeros((c_in, c_out_red, K, K), w_red.dtype).at[:c_in_red].set(w_red)
    w_full = jnp.concatenate([w_red_full, w_green], axis=1)        # (c_in, c_out, K, K)
    b_full = jnp.concatenate([b_red, b_green], axis=0)
    return conv_transpose2d_pallas(x, w_full, b_full, stride=stride, padding=padding,
                                   compute_dtype=compute_dtype)


# ---- pure-JAX reference (correctness check only) ----
def _ref_conv_transpose(x, w, b, stride, padding):
    K = w.shape[2]
    w_conv = jnp.transpose(w[:, :, ::-1, ::-1], (1, 0, 2, 3))      # (Cout, Cin, K, K)
    out = jax.lax.conv_general_dilated(
        x, w_conv, window_strides=(1, 1),
        padding=[(K - 1 - padding, K - 1 - padding)] * 2,
        lhs_dilation=(stride, stride),
        dimension_numbers=("NCHW", "OIHW", "NCHW"),
        precision=jax.lax.Precision.HIGHEST)
    return out + b.reshape(1, -1, 1, 1)


def _ref_forward(params, x, *, stride, padding):
    x_red = x[:, :params["c_in_red"], :, :]
    y_red = _ref_conv_transpose(x_red, params["w_red"], params["b_red"], stride, padding)
    y_green = _ref_conv_transpose(x, params["w_green"], params["b_green"], stride, padding)
    return jnp.concatenate((y_red, y_green), axis=1)


if __name__ == "__main__":
    key = jax.random.PRNGKey(0)
    N, c_in, H, W = 2, 4, 16, 16
    c_out, kernel_size, stride, padding, red_portion = 8, 4, 2, 1, 0.5

    kx, kp = jax.random.split(key)
    x = jax.random.normal(kx, (N, c_in, H, W), jnp.float32)
    params = init_conv_transpose2d_separable(kp, c_in, c_out, kernel_size, red_portion)

    y = conv_transpose2d_separable_forward(params, x, stride=stride, padding=padding)
    y = jax.block_until_ready(y)

    y_ref = _ref_forward(params, x, stride=stride, padding=padding)
    np.testing.assert_allclose(np.asarray(y), np.asarray(y_ref), atol=1e-4, rtol=1e-4)
    H_out = (H - 1) * stride - 2 * padding + kernel_size
    W_out = (W - 1) * stride - 2 * padding + kernel_size
    assert y.shape == (N, c_out, H_out, W_out)

    # bf16 streamed-operand variant (halves HBM traffic; accumulation stays f32).
    y_bf16 = conv_transpose2d_separable_forward(params, x, stride=stride, padding=padding,
                                                compute_dtype=jnp.bfloat16)
    y_bf16 = jax.block_until_ready(y_bf16)
    np.testing.assert_allclose(np.asarray(y_bf16), np.asarray(y_ref), atol=5e-2, rtol=5e-2)

    print("KERNEL_OK")
</pallas_src>

<mosaic_0001>
module attributes {stable_mosaic.version = 11 : i64} {
  func.func @kernel(%arg0: i32, %arg1: memref<9x32x4xf32, #tpu.memory_space<vmem>>, %arg2: memref<32x1xf32, #tpu.memory_space<vmem>>, %arg3: memref<1x4x342xf32, #tpu.memory_space<vmem>>, %arg4: memref<1x32x288xf32, #tpu.memory_space<vmem>>) attributes {dimension_semantics = [#tpu.dimension_semantics<parallel>], iteration_bounds = array<i64: 2>, scalar_prefetch = 0 : i64, scratch_operands = 0 : i64, tpu.core_type = #tpu.core_type<tc>, window_params = [{pipeline_mode = #tpu.pipeline_mode<synchronous>, transform_indices = @transform_0, window_bounds = array<i64: 9, 32, 4>}, {pipeline_mode = #tpu.pipeline_mode<synchronous>, transform_indices = @transform_1, window_bounds = array<i64: 32, 1>}, {transform_indices = @transform_2, window_bounds = array<i64: 1, 4, 342>}, {transform_indices = @transform_3, window_bounds = array<i64: 1, 32, 288>}]} {
    %c0 = arith.constant 0 : index
    %c0_0 = arith.constant 0 : index
    %0 = vector.load %arg2[%c0, %c0_0] : memref<32x1xf32, #tpu.memory_space<vmem>>, vector<32x1xf32>
    %c0_1 = arith.constant 0 : index
    %c0_2 = arith.constant 0 : index
    %c0_3 = arith.constant 0 : index
    %1 = vector.load %arg3[%c0_1, %c0_2, %c0_3] : memref<1x4x342xf32, #tpu.memory_space<vmem>>, vector<1x4x342xf32>
    %2 = vector.shape_cast %1 : vector<1x4x342xf32> to vector<4x342xf32>
    %cst = arith.constant 0.000000e+00 : f32
    %3 = vector.broadcast %cst : f32 to vector<32x288xf32>
    %4 = vector.extract_strided_slice %2 {offsets = [0, 0], sizes = [4, 288], strides = [1, 1]} : vector<4x342xf32> to vector<4x288xf32>
    %c0_4 = arith.constant 0 : index
    %c0_5 = arith.constant 0 : index
    %c0_6 = arith.constant 0 : index
    %5 = vector.load %arg1[%c0_4, %c0_5, %c0_6] : memref<9x32x4xf32, #tpu.memory_space<vmem>>, vector<1x32x4xf32>
    %6 = vector.shape_cast %5 : vector<1x32x4xf32> to vector<32x4xf32>
    %cst_7 = arith.constant dense<0.000000e+00> : vector<32x288xf32>
    %7 = tpu.matmul %6, %4, %cst_7 {dimension_numbers = #tpu.dot_dimension_numbers<[1], [0], [0], [1], [0, 0, 1, 1], [], []>} : vector<32x4xf32>, vector<4x288xf32>, vector<32x288xf32> -> vector<32x288xf32>
    %8 = arith.addf %3, %7 : vector<32x288xf32>
    %9 = vector.extract_strided_slice %2 {offsets = [0, 1], sizes = [4, 288], strides = [1, 1]} : vector<4x342xf32> to vector<4x288xf32>
    %c1 = arith.constant 1 : index
    %c0_8 = arith.constant 0 : index
    %c0_9 = arith.constant 0 : index
    %10 = vector.load %arg1[%c1, %c0_8, %c0_9] : memref<9x32x4xf32, #tpu.memory_space<vmem>>, vector<1x32x4xf32>
    %11 = vector.shape_cast %10 : vector<1x32x4xf32> to vector<32x4xf32>
    %cst_10 = arith.constant dense<0.000000e+00> : vector<32x288xf32>
    %12 = tpu.matmul %11, %9, %cst_10 {dimension_numbers = #tpu.dot_dimension_numbers<[1], [0], [0], [1], [0, 0, 1, 1], [], []>} : vector<32x4xf32>, vector<4x288xf32>, vector<32x288xf32> -> vector<32x288xf32>
    %13 = arith.addf %8, %12 : vector<32x288xf32>
    %14 = vector.extract_strided_slice %2 {offsets = [0, 2], sizes = [4, 288], strides = [1, 1]} : vector<4x342xf32> to vector<4x288xf32>
    %c2 = arith.constant 2 : index
    %c0_11 = arith.constant 0 : index
    %c0_12 = arith.constant 0 : index
    %15 = vector.load %arg1[%c2, %c0_11, %c0_12] : memref<9x32x4xf32, #tpu.memory_space<vmem>>, vector<1x32x4xf32>
    %16 = vector.shape_cast %15 : vector<1x32x4xf32> to vector<32x4xf32>
    %cst_13 = arith.constant dense<0.000000e+00> : vector<32x288xf32>
    %17 = tpu.matmul %16, %14, %cst_13 {dimension_numbers = #tpu.dot_dimension_numbers<[1], [0], [0], [1], [0, 0, 1, 1], [], []>} : vector<32x4xf32>, vector<4x288xf32>, vector<32x288xf32> -> vector<32x288xf32>
    %18 = arith.addf %13, %17 : vector<32x288xf32>
    %19 = vector.extract_strided_slice %2 {offsets = [0, 18], sizes = [4, 288], strides = [1, 1]} : vector<4x342xf32> to vector<4x288xf32>
    %c3 = arith.constant 3 : index
    %c0_14 = arith.constant 0 : index
    %c0_15 = arith.constant 0 : index
    %20 = vector.load %arg1[%c3, %c0_14, %c0_15] : memref<9x32x4xf32, #tpu.memory_space<vmem>>, vector<1x32x4xf32>
    %21 = vector.shape_cast %20 : vector<1x32x4xf32> to vector<32x4xf32>
    %cst_16 = arith.constant dense<0.000000e+00> : vector<32x288xf32>
    %22 = tpu.matmul %21, %19, %cst_16 {dimension_numbers = #tpu.dot_dimension_numbers<[1], [0], [0], [1], [0, 0, 1, 1], [], []>} : vector<32x4xf32>, vector<4x288xf32>, vector<32x288xf32> -> vector<32x288xf32>
    %23 = arith.addf %18, %22 : vector<32x288xf32>
    %24 = vector.extract_strided_slice %2 {offsets = [0, 19], sizes = [4, 288], strides = [1, 1]} : vector<4x342xf32> to vector<4x288xf32>
    %c4 = arith.constant 4 : index
    %c0_17 = arith.constant 0 : index
    %c0_18 = arith.constant 0 : index
    %25 = vector.load %arg1[%c4, %c0_17, %c0_18] : memref<9x32x4xf32, #tpu.memory_space<vmem>>, vector<1x32x4xf32>
    %26 = vector.shape_cast %25 : vector<1x32x4xf32> to vector<32x4xf32>
    %cst_19 = arith.constant dense<0.000000e+00> : vector<32x288xf32>
    %27 = tpu.matmul %26, %24, %cst_19 {dimension_numbers = #tpu.dot_dimension_numbers<[1], [0], [0], [1], [0, 0, 1, 1], [], []>} : vector<32x4xf32>, vector<4x288xf32>, vector<32x288xf32> -> vector<32x288xf32>
    %28 = arith.addf %23, %27 : vector<32x288xf32>
    %29 = vector.extract_strided_slice %2 {offsets = [0, 20], sizes = [4, 288], strides = [1, 1]} : vector<4x342xf32> to vector<4x288xf32>
    %c5 = arith.constant 5 : index
    %c0_20 = arith.constant 0 : index
    %c0_21 = arith.constant 0 : index
    %30 = vector.load %arg1[%c5, %c0_20, %c0_21] : memref<9x32x4xf32, #tpu.memory_space<vmem>>, vector<1x32x4xf32>
    %31 = vector.shape_cast %30 : vector<1x32x4xf32> to vector<32x4xf32>
    %cst_22 = arith.constant dense<0.000000e+00> : vector<32x288xf32>
    %32 = tpu.matmul %31, %29, %cst_22 {dimension_numbers = #tpu.dot_dimension_numbers<[1], [0], [0], [1], [0, 0, 1, 1], [], []>} : vector<32x4xf32>, vector<4x288xf32>, vector<32x288xf32> -> vector<32x288xf32>
    %33 = arith.addf %28, %32 : vector<32x288xf32>
    %34 = vector.extract_strided_slice %2 {offsets = [0, 36], sizes = [4, 288], strides = [1, 1]} : vector<4x342xf32> to vector<4x288xf32>
    %c6 = arith.constant 6 : index
    %c0_23 = arith.constant 0 : index
    %c0_24 = arith.constant 0 : index
    %35 = vector.load %arg1[%c6, %c0_23, %c0_24] : memref<9x32x4xf32, #tpu.memory_space<vmem>>, vector<1x32x4xf32>
    %36 = vector.shape_cast %35 : vector<1x32x4xf32> to vector<32x4xf32>
    %cst_25 = arith.constant dense<0.000000e+00> : vector<32x288xf32>
    %37 = tpu.matmul %36, %34, %cst_25 {dimension_numbers = #tpu.dot_dimension_numbers<[1], [0], [0], [1], [0, 0, 1, 1], [], []>} : vector<32x4xf32>, vector<4x288xf32>, vector<32x288xf32> -> vector<32x288xf32>
    %38 = arith.addf %33, %37 : vector<32x288xf32>
    %39 = vector.extract_strided_slice %2 {offsets = [0, 37], sizes = [4, 288], strides = [1, 1]} : vector<4x342xf32> to vector<4x288xf32>
    %c7 = arith.constant 7 : index
    %c0_26 = arith.constant 0 : index
    %c0_27 = arith.constant 0 : index
    %40 = vector.load %arg1[%c7, %c0_26, %c0_27] : memref<9x32x4xf32, #tpu.memory_space<vmem>>, vector<1x32x4xf32>
    %41 = vector.shape_cast %40 : vector<1x32x4xf32> to vector<32x4xf32>
    %cst_28 = arith.constant dense<0.000000e+00> : vector<32x288xf32>
    %42 = tpu.matmul %41, %39, %cst_28 {dimension_numbers = #tpu.dot_dimension_numbers<[1], [0], [0], [1], [0, 0, 1, 1], [], []>} : vector<32x4xf32>, vector<4x288xf32>, vector<32x288xf32> -> vector<32x288xf32>
    %43 = arith.addf %38, %42 : vector<32x288xf32>
    %44 = vector.extract_strided_slice %2 {offsets = [0, 38], sizes = [4, 288], strides = [1, 1]} : vector<4x342xf32> to vector<4x288xf32>
    %c8 = arith.constant 8 : index
    %c0_29 = arith.constant 0 : index
    %c0_30 = arith.constant 0 : index
    %45 = vector.load %arg1[%c8, %c0_29, %c0_30] : memref<9x32x4xf32, #tpu.memory_space<vmem>>, vector<1x32x4xf32>
    %46 = vector.shape_cast %45 : vector<1x32x4xf32> to vector<32x4xf32>
    %cst_31 = arith.constant dense<0.000000e+00> : vector<32x288xf32>
    %47 = tpu.matmul %46, %44, %cst_31 {dimension_numbers = #tpu.dot_dimension_numbers<[1], [0], [0], [1], [0, 0, 1, 1], [], []>} : vector<32x4xf32>, vector<4x288xf32>, vector<32x288xf32> -> vector<32x288xf32>
    %48 = arith.addf %43, %47 : vector<32x288xf32>
    %49 = vector.broadcast %0 : vector<32x1xf32> to vector<32x288xf32>
    %50 = arith.addf %48, %49 : vector<32x288xf32>
    %c0_32 = arith.constant 0 : index
    %c0_33 = arith.constant 0 : index
    %c0_34 = arith.constant 0 : index
    %51 = vector.load %arg4[%c0_32, %c0_33, %c0_34] : memref<1x32x288xf32, #tpu.memory_space<vmem>>, vector<1x32x288xf32>
    %52 = vector.shape_cast %51 : vector<1x32x288xf32> to vector<32x288xf32>
    %53 = vector.shape_cast %50 : vector<32x288xf32> to vector<1x32x288xf32>
    tpu.vector_store %arg4[%c0_32, %c0_33, %c0_34], %53 {strides = array<i32>} : memref<1x32x288xf32, #tpu.memory_space<vmem>>, vector<1x32x288xf32>,
    return
  }
  func.func @transform_0(%arg0: i32) -> (i32, i32, i32) {
    %c0_i32 = arith.constant 0 : i32
    %c0_i32_0 = arith.constant 0 : i32
    %c0_i32_1 = arith.constant 0 : i32
    %c0_i32_2 = arith.constant 0 : i32
    return %c0_i32, %c0_i32_0, %c0_i32_1 : i32, i32, i32
  }
  func.func @transform_1(%arg0: i32) -> (i32, i32) {
    %c0_i32 = arith.constant 0 : i32
    %c0_i32_0 = arith.constant 0 : i32
    %c0_i32_1 = arith.constant 0 : i32
    return %c0_i32, %c0_i32_0 : i32, i32
  }
  func.func @transform_2(%arg0: i32) -> (i32, i32, i32) {
    %c0_i32 = arith.constant 0 : i32
    %c0_i32_0 = arith.constant 0 : i32
    %c0_i32_1 = arith.constant 0 : i32
    return %arg0, %c0_i32, %c0_i32_0 : i32, i32, i32
  }
  func.func @transform_3(%arg0: i32) -> (i32, i32, i32) {
    %c0_i32 = arith.constant 0 : i32
    %c0_i32_0 = arith.constant 0 : i32
    %c0_i32_1 = arith.constant 0 : i32
    return %arg0, %c0_i32, %c0_i32_0 : i32, i32, i32
  }
}

</mosaic_0001>

<bundles_post_ra>
// kernel: tpu_custom_call.1
= control target key start
LH: loop header
LB: loop body
LE: loop exit
PB: predicated region body
PF: predicated region fallthrough
CT: control target
= control target key end

     0   :  { %8 = vsyncpa [#allocation3], 0  ;;  %s3270_s0 = inlined_call_operand.vmem [shape: f32[9,32,4], index: 0, kind: input, shape index: {}]   ;;  %s3271_s1 = inlined_call_operand.vmem [shape: f32[32,1], index: 1, kind: input, shape index: {}]   ;;  %s3272_s2 = inlined_call_operand.vmem [shape: f32[2,4,342], index: 2, kind: input, shape index: {}]   ;;  %s3273_s3 = inlined_call_operand.hbm [shape: f32[2,32,288], index: 3, kind: output, shape index: {}]  }
   0x1   :  { %10 = vsyncpa [#allocation3 + $0x1], 0  ;;  %s2737_s12 = smov 0   ;;  %s2739_s13 = smov 0  }
   0x2   :  { %s2741_s14 = smov 0   ;;  %s2743_s15 = smov 0  }
   0x3 LB: > { %s2758_s16 = sadd.s32 4294967295, %s2702_s15   ;;  %s2229_s17 = sadd.s32 4294967294, %s2702_s15   ;;  %s2702_s15 = sphi %s2743_s15, %s3279_s15   ;;  %s2698_s14 = sphi %s2741_s14, %s3278_s14   ;;  %s2694_s13 = sphi %s2739_s13, %s3277_s13   ;;  %s2690_s12 = sphi %s2737_s12, %s3276_s12  }
   0x4   : > { %s2762_s18 = sadd.s32 1, %s2702_s15   ;;  %s91_s19 = sadd.s32 1, %s2698_s14 }
   0x5   : > { %s88_s20 = ssub.s32 %s2702_s15, %s2762_s18  ;;  %p101_p0 = scmp.ne.s32.totalorder %s2698_s14, %s2694_s13 }
   0x6   : > { %p89_p1 = scmp.eq.s32.totalorder %s88_s20, 0  ;;  %p102_p2 = scmp.eq.s32.totalorder %s2758_s16, 1 }
   0x7   : > { %p107_p3 = scmp.ne.s32.totalorder %s2694_s13, %s2690_s12  ;;  %p108_p4 = scmp.eq.s32.totalorder %s2229_s17, 1 }
   0x8   : > { %s2773_s21 = scalar_select %p89_p1, %s2698_s14, %s91_s19  }
   0x9   : > { %p2775_p5 = por %p102_p2, %p101_p0  ;;  %p2779_p6 = por %p108_p4, %p107_p3 }
   0xa   : > { %p2232_p7 = scmp.ge.s32.totalorder %s2702_s15, 1  ;;  %p140_p8 = scmp.lt.s32.totalorder %s2702_s15, 3 }
   0xc   : > { %p141_p9 = pnand %p2232_p7, %p140_p8 }
   0xd   : > { %p164_p10 = scmp.lt.s32.totalorder (!%p141_p9), %s2758_s16, 1  ;;  %v2704_v0 = vmov (!%p141_p9), 0.0   ;;  %s2705_s29 = smov (!%p141_p9), 126   ;;  %v169_v4 = vld [vmem:[%s3271_s1] sm:$0xff] (!%p141_p9)  ;;  %v170_v5 = vld [vmem:[%s3271_s1 + $0x8] sm:$0xff] (!%p141_p9)  ;;  %v2713_v6 = vmov (!%p141_p9), 0  }
   0xe   : > { %144 = sbr.rel (%p141_p9) target bundleno = 487 (0x1e7), region = 32  ;;  %678 = vmatprep.mubr.f32.mxu0 (!%p141_p9), %v2704_v0  ;;  %280 = vmatprep.mubr.f32.mxu1 (!%p141_p9), %v2704_v0  ;;  %s2706_s30 = smov (!%p141_p9), 127   ;;  %v171_v7 = vld [vmem:[%s3271_s1 + $0x10] sm:$0xff] (!%p141_p9)  ;;  %v172_v8 = vld [vmem:[%s3271_s1 + $0x18] sm:$0xff] (!%p141_p9)  ;;  %vm593_vm0 = vcmask (!%p141_p9), 1031168   ;;  %vm209_vm1 = vcmask (!%p141_p9), 1043456  }
   0xf   : > { %s2707_s4 = smov (!%p141_p9), 110   ;;  %s2708_s5 = smov (!%p141_p9), 109   ;;  %2637 = vset.pattern.permute.xlu0 (!%p141_p9), %v2713_v6  ;;  %2638 = vset.pattern.permute.xlu1 (!%p141_p9), %v2713_v6  ;;  %vm196_vm2 = vcmask (!%p141_p9), 31744   ;;  %v2846_v15 = vld [vmem:[%s3270_s0 + $0x40] sm:$0xff] (!%p141_p9)  ;;  %vm193_vm3 = vcmask (!%p141_p9), 1039360   ;;  %v2862_v21 = vld [vmem:[%s3270_s0 + $0x48] sm:$0xff] (!%p141_p9) }
  0x10   : > { %s2709_s6 = smov (!%p141_p9), 108   ;;  %s2710_s7 = smov (!%p141_p9), 92   ;;  %v2234_v20 = vld [vmem:[%s3270_s0 + $0x20] sm:$0xff] (!%p141_p9)  ;;  %vm811_vm4 = vcmask (!%p141_p9), 900096   ;;  %v2235_v25 = vld [vmem:[%s3270_s0 + $0x28] sm:$0xff] (!%p141_p9)  ;;  %v2882_v26 = vld [vmem:[%s3270_s0 + $0x50] sm:$0xff] (!%p141_p9) }
  0x11   : > { %s2711_s8 = smov (!%p141_p9), 91   ;;  %s2712_s9 = smov (!%p141_p9), 90   ;;  %v2236_v30 = vld [vmem:[%s3270_s0 + $0x30] sm:$0xff] (!%p141_p9)  ;;  %v2900_v31 = vld [vmem:[%s3270_s0 + $0x60] sm:$0xff] (!%p141_p9)  ;;  %vm1029_vm5 = vcmask (!%p141_p9), 891904   ;;  %v2237_v35 = vld [vmem:[%s3270_s0 + $0x38] sm:$0xff] (!%p141_p9) }
  0x12   : > { %v2916_v37 = vld [vmem:[%s3270_s0 + $0x68] sm:$0xff] (!%p141_p9)  ;;  %vm1247_vm6 = vcmask (!%p141_p9), 883712   ;;  %v2932_v41 = vld [vmem:[%s3270_s0 + $0x70] sm:$0xff] (!%p141_p9)  ;;  %v2943_v42 = vld [vmem:[%s3270_s0 + $0x78] sm:$0xff] (!%p141_p9)  ;;  %vm1465_vm7 = vcmask (!%p141_p9), 752640   ;;  %vm1683_vm8 = vcmask (!%p141_p9), 744448  }
  0x13   : > { %v175_v44 = vld [vmem:[%s3270_s0] sm:$0xff] (!%p141_p9)  ;;  %v176_v49 = vld [vmem:[%s3270_s0 + $0x8] sm:$0xff] (!%p141_p9)  ;;  %v177_v52 = vld [vmem:[%s3270_s0 + $0x10] sm:$0xff] (!%p141_p9)  ;;  %vm1901_vm9 = vcmask (!%p141_p9), 736256   ;;  %s161_s27 = sand.u32 (!%p141_p9), 1, %s2694_s13   ;;  %vm2142_vm10 = vcmask (!%p141_p9), 261120  }
  0x14   : > { %v2960_v45 = vld [vmem:[%s3270_s0 + $0x80] sm:$0xff] (!%p141_p9)  ;;  %v2981_v51 = vld [vmem:[%s3270_s0 + $0x88] sm:$0xff] (!%p141_p9)  ;;  %v2997_v53 = vld [vmem:[%s3270_s0 + $0x90] sm:$0xff] (!%p141_p9) }
  0x15   : > { %s165_s24 = scalar_select %p164_p10, %s2758_s16, 1  ;;  %v178_v54 = vld [vmem:[%s3270_s0 + $0x18] sm:$0xff]  ;;  %v3020_v57 = vld [vmem:[%s3270_s0 + $0xa0] sm:$0xff]  ;;  %v3038_v62 = vld [vmem:[%s3270_s0 + $0xa8] sm:$0xff] }
  0x16   : > { %v3010_v55 = vld [vmem:[%s3270_s0 + $0x98] sm:$0xff] }
  0x17   : > { %s2584_s25 = smul.u32 12, %s165_s24  ;;  %v2263_v63 = vld [vmem:[%s3270_s0 + $0x58] sm:$0xff] }
  0x19   : > { %s168_s28 = scalar_lea.vmem %s3272_s2, %s2584_s25 }
  0x1a   : > { %v2792_v1 = vld [vmem:[%s168_s28 + $0x8] sm:$0xf]  ;;  %v2794_v2 = vld [vmem:[%s168_s28] sm:$0xff]  ;;  %s2583_s28 = smul.u32 96, %s161_s27 }
  0x1b   : > { %591 = vrot.lane.b32.xlu0 %v2792_v1, %s2705_s29  ;;  %587 = vrot.lane.b32.xlu1 %v2794_v2, %s2705_s29  ;;  %v2800_v3 = vcombine.high %v2794_v2, %v2794_v2 }
  0x1f   : > { %189 = vrot.lane.b32.xlu1 %v2800_v3, %s2706_s30  ;;  %589 = vrot.lane.b32.xlu0 %v2800_v3, %s2705_s29  ;;  %s3200_s29 = scalar_lea.vmem [#allocation2], %s2583_s28 }
  0x23   : > { %187 = vrot.lane.b32.xlu1 %v2794_v2, %s2706_s30  ;;  %191 = vrot.lane.b32.xlu0 %v2792_v1, %s2706_s30  ;;  %s2585_s30 = smul.u32 1536, %s2758_s16 }
  0x27   : > { %809 = vrot.lane.b32.xlu1 %v2792_v1, %s2707_s4  ;;  %807 = vrot.lane.b32.xlu0 %v2800_v3, %s2707_s4 }
  0x2b   : > { %805 = vrot.lane.b32.xlu0 %v2794_v2, %s2707_s4  ;;  %1025 = vrot.lane.b32.xlu1 %v2800_v3, %s2708_s5  ;;  %s2167_s4 = sshll.u32 %s3200_s29, 4  ;;  %s3220_s4 = int_to_ptr.vmem [resolvable:$true] %s2167_s4 }
  0x2f   : > { %1027 = vrot.lane.b32.xlu0 %v2792_v1, %s2708_s5  ;;  %1023 = vrot.lane.b32.xlu1 %v2794_v2, %s2708_s5 }
  0x33   : > { %1243 = vrot.lane.b32.xlu0 %v2800_v3, %s2709_s6  ;;  %1245 = vrot.lane.b32.xlu1 %v2792_v1, %s2709_s6 }
  0x37   : > { %1241 = vrot.lane.b32.xlu0 %v2794_v2, %s2709_s6  ;;  %1461 = vrot.lane.b32.xlu1 %v2800_v3, %s2710_s7  ;;  %s3217_s6 = scalar_lea.hbm %s3273_s3, %s2585_s30 }
  0x3b   : > { %1463 = vrot.lane.b32.xlu0 %v2792_v1, %s2710_s7  ;;  %1459 = vrot.lane.b32.xlu1 %v2794_v2, %s2710_s7  ;;  %s3229_s7 = scalar_lea.sflag [#allocation3], %s161_s27 }
  0x3f   : > { %1679 = vrot.lane.b32.xlu0 %v2800_v3, %s2711_s8  ;;  %1681 = vrot.lane.b32.xlu1 %v2792_v1, %s2711_s8 }
  0x43   : > { %1677 = vrot.lane.b32.xlu0 %v2794_v2, %s2711_s8  ;;  %1897 = vrot.lane.b32.xlu1 %v2800_v3, %s2712_s9  ;;  %s2640_s8 = scalar_lea.vmem %s3220_s4, 1536 }
  0x44   : > { %p2641_p11 = scmp.ne.s32.totalorder %s3220_s4, %s2640_s8 }
  0x46   : > { %p2642_p12 = pnand %p2641_p11, %p2775_p5 }
  0x47   : > { %1899 = vrot.lane.b32.xlu0 %v2792_v1, %s2712_s9  ;;  %1895 = vrot.lane.b32.xlu1 %v2794_v2, %s2712_s9  ;;  %s2714_s9 = smov [#allocation2]  }
  0x48   : > { %p2643_p13 = pneg %p2642_p12  ;;  %s2644_s10 = sshll.u32 %s2714_s9, 4  ;;  %s2645_s10 = int_to_ptr.vmem [resolvable:$false] %s2644_s10 }
  0x49   : > { %s2646_s11 = scalar_lea.vmem %s2645_s10, 3072  ;;  %p2647_p0 = scmp.lt.s32.totalorder %s3220_s4, %s2645_s10 }
  0x4a   : > { %p2648_p1 = scmp.lt.s32.totalorder %s2646_s11, %s2640_s8 }
  0x4b   : > { %2110 = vperm.xlu0 %2637, %v169_v4   ;;  %2115 = vperm.xlu1 %2638, %v170_v5   ;;  %v2320_v5 = vld [vmem:[%s3270_s0 + $0xc0] sm:$0xff] }
  0x4c   : > { %p2649_p2 = por %p2648_p1, %p2647_p0 }
  0x4e   : > { %p2650_p3 = pnand %p2649_p2, %p2643_p13 }
  0x4f   : > { %2120 = vperm.xlu1 %2638, %v171_v7   ;;  %2125 = vperm.xlu0 %2637, %v172_v8  }
  0x8d   : > { %v2836_v9 = vpop.permute.xlu0 %591  ;;  %v588_v10 = vpop.permute.xlu1 %587 }
  0x91   : > { %v190_v11 = vpop.permute.xlu1 %189  ;;  %v590_v12 = vpop.permute.xlu0 %589 }
  0x92   : > { %v2839_v13 = vsel %vm593_vm0, %v590_v12, %v2836_v9  ;;  %v2841_v14 = vsel %vm593_vm0, %v588_v10, %v590_v12  ;;  %v2322_v10 = vld [vmem:[%s3270_s0 + $0xd0] sm:$0xff] }
  0x93   : > { %2264 = vmatprep.subr.msk.mxu0 %vm209_vm1, %v2839_v13 }
  0x94   : > { %2265 = vmatpush1.msk.msra.mxu0 %vm209_vm1, %v2841_v14 }
  0x95   : > { %v188_v16 = vpop.permute.xlu1 %187  ;;  %2266 = vmatmul.mubr.msk.f32.vlgmr.msra.gmra.mrb[0].mxu0 %vm196_vm2, %v2846_v15  ;;  %v192_v17 = vpop.permute.xlu0 %191 }
  0x96   : > { %v195_v18 = vsel %vm193_vm3, %v190_v11, %v192_v17  ;;  %v194_v19 = vsel %vm193_vm3, %v188_v16, %v190_v11  ;;  %684 = vmatprep.mubr.f32.mxu0 %v2704_v0  ;;  %v2323_v11 = vld [vmem:[%s3270_s0 + $0xd8] sm:$0xff]  ;;  %v2337_v16 = vld [vmem:[%s3270_s0 + $0xf0] sm:$0xff] }
  0x97   : > { %2238 = vmatprep.subr.msk.mxu1 %vm209_vm1, %v195_v18  ;;  %v2350_v18 = vld [vmem:[%s3270_s0 + $0x100] sm:$0xff] }
  0x98   : > { %2239 = vmatpush1.msk.msra.mxu1 %vm209_vm1, %v194_v19  ;;  %v2351_v19 = vld [vmem:[%s3270_s0 + $0x108] sm:$0xff] }
  0x99   : > { %v2865_v22 = vpop.permute.xlu1 %809  ;;  %2240 = vmatmul.mubr.msk.f32.vlgmr.msra.gmra.mrb[0].mxu1 %vm196_vm2, %v2234_v20  ;;  %2413 = vmatprep.subr.msk.mxu1 %vm209_vm1, %v192_v17  ;;  %v808_v23 = vpop.permute.xlu0 %807 }
  0x9a   : > { %2267 = vmatmul.mubr.msk.f32.gmra.mrb[2].mxu0 %vm196_vm2, %v2862_v21  ;;  %v813_v24 = vsel %vm811_vm4, %v808_v23, %v2865_v22  ;;  %2414 = vmatpush3.msk.msra.mxu1 %vm209_vm1, %v192_v17  ;;  %v2338_v17 = vld [vmem:[%s3270_s0 + $0xf8] sm:$0xff] }
  0x9b   : > { %2279 = vmatprep.subr.msk.mxu0 %vm209_vm1, %v813_v24  ;;  %286 = vmatprep.mubr.f32.mxu1 %v2704_v0 }
  0x9c   : > { %690 = vmatprep.mubr.f32.mxu0 %v2704_v0  ;;  %2249 = vmatprep.subr.msk.mxu1 %vm209_vm1, %v2800_v3  ;;  %v2308_v3 = vld [vmem:[%s3270_s0 + $0xb8] sm:$0xff] }
  0x9d   : > { %2241 = vmatmul.mubr.msk.f32.gmra.mrb[2].mxu1 %vm196_vm2, %v2235_v25  ;;  %v806_v27 = vpop.permute.xlu0 %805  ;;  %v1026_v28 = vpop.permute.xlu1 %1025 }
  0x9e   : > { %2268 = vmatmul.mubr.msk.f32.gmra.mrb[4].mxu0 %vm196_vm2, %v2882_v26  ;;  %v812_v29 = vsel %vm811_vm4, %v806_v27, %v808_v23  ;;  %292 = vmatprep.mubr.f32.mxu1 %v2704_v0 }
  0x9f   : > { %2280 = vmatpush1.msk.msra.mxu0 %vm209_vm1, %v812_v29  ;;  %896 = vmatprep.mubr.f32.mxu0 %v2704_v0 }
  0xa1   : > { %2242 = vmatmul.mubr.msk.f32.gmra.mrb[4].mxu1 %vm196_vm2, %v2236_v30  ;;  %v2903_v32 = vpop.permute.xlu0 %1027  ;;  %v1024_v33 = vpop.permute.xlu1 %1023 }
  0xa2   : > { %2281 = vmatmul.mubr.msk.f32.vlgmr.msra.gmra.mrb[0].mxu0 %vm196_vm2, %v2900_v31  ;;  %298 = vmatprep.mubr.f32.mxu1 %v2704_v0  ;;  %v1030_v34 = vsel %vm1029_vm5, %v1024_v33, %v1026_v28  ;;  %v1031_v36 = vsel %vm1029_vm5, %v1026_v28, %v2903_v32 }
  0xa3   : > { %902 = vmatprep.mubr.f32.mxu0 %v2704_v0  ;;  %2294 = vmatprep.subr.msk.mxu0 %vm209_vm1, %v1031_v36 }
  0xa4   : > { %2295 = vmatpush1.msk.msra.mxu0 %vm209_vm1, %v1030_v34 }
  0xa5   : > { %2243 = vmatmul.mubr.msk.f32.gmra.mrb[6].mxu1 %vm196_vm2, %v2237_v35  ;;  %v1244_v38 = vpop.permute.xlu0 %1243  ;;  %v2921_v39 = vpop.permute.xlu1 %1245 }
  0xa6   : > { %2282 = vmatmul.mubr.msk.f32.gmra.mrb[2].mxu0 %vm196_vm2, %v2916_v37  ;;  %2415 = vmatprep.mubr.msk.f32.mxu1 %vm196_vm2, %v2234_v20  ;;  %v1249_v40 = vsel %vm1247_vm6, %v1244_v38, %v2921_v39  ;;  %v2352_v20 = vld [vmem:[%s3270_s0 + $0x110] sm:$0xff] }
  0xa7   : > { %908 = vmatprep.mubr.f32.mxu0 %v2704_v0  ;;  %2309 = vmatprep.subr.msk.mxu0 %vm209_vm1, %v1249_v40 }
  0xa9   : > { %2416 = vmatmul.mubr.msk.f32.vlgmr.msra.gmra.mrb[8].mxu1 %vm196_vm2, %v2235_v25  ;;  %v1242_v43 = vpop.permute.xlu0 %1241  ;;  %v1462_v48 = vpop.permute.xlu1 %1461 }
  0xaa   : > { %2283 = vmatmul.mubr.msk.f32.gmra.mrb[4].mxu0 %vm196_vm2, %v2932_v41  ;;  %2418 = vmatprep.mubr.msk.f32.mxu1 %vm196_vm2, %v2236_v30  ;;  %v1248_v47 = vsel %vm1247_vm6, %v1242_v43, %v1244_v38 }
  0xab   : > { %914 = vmatprep.mubr.f32.mxu0 %v2704_v0  ;;  %2250 = vmatpush1.msk.msra.mxu1 %vm209_vm1, %v2794_v2 }
  0xac   : > { %2421 = vmatprep.subr.msk.mxu1 %vm209_vm1, %v2792_v1 }
  0xad   : > { %2419 = vmatmul.mubr.msk.f32.gmra.mrb[10].mxu1 %vm196_vm2, %v2237_v35  ;;  %v2962_v46 = vpop.permute.xlu0 %1463  ;;  %v1460_v56 = vpop.permute.xlu1 %1459 }
  0xae   : > { %2284 = vmatmul.mubr.msk.f32.gmra.mrb[6].mxu0 %vm196_vm2, %v2943_v42  ;;  %472 = vmatprep.mubr.f32.mxu1 %v2704_v0  ;;  %v1467_v50 = vsel %vm1465_vm7, %v1462_v48, %v2962_v46  ;;  %v1466_v59 = vsel %vm1465_vm7, %v1460_v56, %v1462_v48 }
  0xaf   : > { %1114 = vmatprep.mubr.f32.mxu0 %v2704_v0 }
  0xb1   : > { %2251 = vmatmul.mubr.msk.f32.vlgmr.msra.gmra.mrb[0].mxu1 %vm196_vm2, %v175_v44  ;;  %v3022_v58 = vpop.permute.xlu1 %1681  ;;  %v1680_v60 = vpop.permute.xlu0 %1679 }
  0xb2   : > { %2422 = vmatpush3.msk.msra.mxu1 %vm209_vm1, %v2792_v1  ;;  %2296 = vmatmul.mubr.msk.f32.vlgmr.msra.gmra.mrb[0].mxu0 %vm196_vm2, %v2960_v45  ;;  %v1685_v61 = vsel %vm1683_vm8, %v1680_v60, %v3022_v58  ;;  %v2307_v1 = vld [vmem:[%s3270_s0 + $0xb0] sm:$0xff] }
  0xb3   : > { %2485 = vmatprep.subr.msk.mxu1 %vm209_vm1, %v2839_v13  ;;  %478 = vmatprep.mubr.f32.mxu1 %v2704_v0  ;;  %v2335_v13 = vld [vmem:[%s3270_s0 + $0xe0] sm:$0xff] }
  0xb4   : > { %1120 = vmatprep.mubr.f32.mxu0 %v2704_v0  ;;  %2310 = vmatpush1.msk.msra.mxu0 %vm209_vm1, %v1248_v47 }
  0xb5   : > { %2252 = vmatmul.mubr.msk.f32.gmra.mrb[2].mxu1 %vm196_vm2, %v176_v49  ;;  %2324 = vmatprep.subr.msk.mxu0 %vm209_vm1, %v1467_v50  ;;  %v1678_v2 = vpop.permute.xlu0 %1677  ;;  %v1898_v7 = vpop.permute.xlu1 %1897 }
  0xb6   : > { %2297 = vmatmul.mubr.msk.f32.gmra.mrb[2].mxu0 %vm196_vm2, %v2981_v51  ;;  %484 = vmatprep.mubr.f32.mxu1 %v2704_v0  ;;  %v1684_v6 = vsel %vm1683_vm8, %v1678_v2, %v1680_v60 }
  0xb7   : > { %1126 = vmatprep.mubr.f32.mxu0 %v2704_v0 }
  0xb9   : > { %2253 = vmatmul.mubr.msk.f32.gmra.mrb[4].mxu1 %vm196_vm2, %v177_v52  ;;  %v3071_v4 = vpop.permute.xlu0 %1899  ;;  %v1896_v12 = vpop.permute.xlu1 %1895 }
  0xba   : > { %2298 = vmatmul.mubr.msk.f32.gmra.mrb[4].mxu0 %vm196_vm2, %v2997_v53  ;;  %490 = vmatprep.mubr.f32.mxu1 %v2704_v0  ;;  %v1903_v8 = vsel %vm1901_vm9, %v1898_v7, %v3071_v4 }
  0xbb   : > { %1132 = vmatprep.mubr.f32.mxu0 %v2704_v0 }
  0xbd   : > { %2254 = vmatmul.mubr.msk.f32.gmra.mrb[6].mxu1 %vm196_vm2, %v178_v54 }
  0xbe   : > { %2299 = vmatmul.mubr.msk.f32.gmra.mrb[6].mxu0 %vm196_vm2, %v3010_v55  ;;  %2423 = vmatprep.mubr.msk.f32.mxu1 %vm196_vm2, %v175_v44 }
  0xbf   : > { %1332 = vmatprep.mubr.f32.mxu0 %v2704_v0 }
  0xc1   : > { %2424 = vmatmul.mubr.msk.f32.vlgmr.msra.gmra.mrb[8].mxu1 %vm196_vm2, %v176_v49 }
  0xc2   : > { %2486 = vmatpush1.msk.msra.mxu1 %vm209_vm1, %v2841_v14  ;;  %2311 = vmatmul.mubr.msk.f32.vlgmr.msra.gmra.mrb[0].mxu0 %vm196_vm2, %v3020_v57  ;;  %v1902_v14 = vsel %vm1901_vm9, %v1896_v12, %v1898_v7 }
  0xc3   : > { %2429 = vmatprep.subr.msk.mxu1 %vm209_vm1, %v2836_v9  ;;  %2426 = vmatprep.mubr.msk.f32.mxu1 %vm196_vm2, %v177_v52 }
  0xc4   : > { %1338 = vmatprep.mubr.f32.mxu0 %v2704_v0  ;;  %2325 = vmatpush1.msk.msra.mxu0 %vm209_vm1, %v1466_v59 }
  0xc5   : > { %2427 = vmatmul.mubr.msk.f32.gmra.mrb[10].mxu1 %vm196_vm2, %v178_v54  ;;  %2339 = vmatprep.subr.msk.mxu0 %vm209_vm1, %v1685_v61 }
  0xc6   : > { %2312 = vmatmul.mubr.msk.f32.gmra.mrb[2].mxu0 %vm196_vm2, %v3038_v62  ;;  %696 = vmatprep.mubr.f32.mxu1 %v2704_v0 }
  0xc7   : > { %1344 = vmatprep.mubr.f32.mxu0 %v2704_v0 }
  0xc9   : > { %2269 = vmatmul.mubr.msk.f32.vlgmr.msra.gmra.mrb[6].mxu1 %vm196_vm2, %v2263_v63 }
  0xca   : > { %2430 = vmatpush3.msk.msra.mxu1 %vm209_vm1, %v2836_v9  ;;  %2313 = vmatmul.mubr.msk.f32.gmra.mrb[4].mxu0 %vm196_vm2, %v2307_v1  ;;  %v2321_v9 = vld [vmem:[%s3270_s0 + $0xc8] sm:$0xff]  ;;  %v2111_v30 = vpop.permute.xlu0 %2110  ;;  %v2116_v34 = vpop.permute.xlu1 %2115 }
  0xcb   : > { %2437 = vmatprep.subr.msk.mxu1 %vm209_vm1, %v2865_v22  ;;  %2431 = vmatprep.mubr.msk.f32.mxu1 %vm196_vm2, %v2846_v15  ;;  %v2336_v15 = vld [vmem:[%s3270_s0 + $0xe8] sm:$0xff] }
  0xcc   : > { %1350 = vmatprep.mubr.f32.mxu0 %v2704_v0 }
  0xcd   : > { %2432 = vmatmul.mubr.msk.f32.vlgmr.msra.gmra.mrb[8].mxu1 %vm196_vm2, %v2862_v21  ;;  %v2353_v21 = vld [vmem:[%s3270_s0 + $0x118] sm:$0xff] }
  0xce   : > { %2438 = vmatpush3.msk.msra.mxu1 %vm209_vm1, %v2865_v22  ;;  %2314 = vmatmul.mubr.msk.f32.gmra.mrb[6].mxu0 %vm196_vm2, %v2308_v3  ;;  %v2121_v44 = vpop.permute.xlu1 %2120  ;;  %v2126_v50 = vpop.permute.xlu0 %2125 }
  0xcf   : > { %2445 = vmatprep.subr.msk.mxu1 %vm209_vm1, %v2903_v32  ;;  %2434 = vmatprep.mubr.msk.f32.mxu1 %vm196_vm2, %v2882_v26 }
  0xd0   : > { %1550 = vmatprep.mubr.f32.mxu0 %v2704_v0 }
  0xd1   : > { %2435 = vmatmul.mubr.msk.f32.gmra.mrb[10].mxu1 %vm196_vm2, %v2263_v63 }
  0xd2   : > { %2326 = vmatmul.mubr.msk.f32.vlgmr.msra.gmra.mrb[0].mxu0 %vm196_vm2, %v2320_v5  ;;  %2439 = vmatprep.mubr.msk.f32.mxu1 %vm196_vm2, %v2900_v31 }
  0xd3   : > { %1556 = vmatprep.mubr.f32.mxu0 %v2704_v0  ;;  %2340 = vmatpush1.msk.msra.mxu0 %vm209_vm1, %v1684_v6 }
  0xd4   : > { %2354 = vmatprep.subr.msk.mxu0 %vm209_vm1, %v1903_v8 }
  0xd5   : > { %2440 = vmatmul.mubr.msk.f32.vlgmr.msra.gmra.mrb[8].mxu1 %vm196_vm2, %v2916_v37 }
  0xd6   : > { %2446 = vmatpush3.msk.msra.mxu1 %vm209_vm1, %v2903_v32  ;;  %2327 = vmatmul.mubr.msk.f32.gmra.mrb[2].mxu0 %vm196_vm2, %v2321_v9 }
  0xd7   : > { %2453 = vmatprep.subr.msk.mxu1 %vm209_vm1, %v2921_v39  ;;  %2442 = vmatprep.mubr.msk.f32.mxu1 %vm196_vm2, %v2932_v41 }
  0xd8   : > { %1562 = vmatprep.mubr.f32.mxu0 %v2704_v0 }
  0xd9   : > { %2443 = vmatmul.mubr.msk.f32.gmra.mrb[10].mxu1 %vm196_vm2, %v2943_v42 }
  0xda   : > { %2328 = vmatmul.mubr.msk.f32.gmra.mrb[4].mxu0 %vm196_vm2, %v2322_v10  ;;  %2447 = vmatprep.mubr.msk.f32.mxu1 %vm196_vm2, %v2960_v45 }
  0xdb   : > { %1568 = vmatprep.mubr.f32.mxu0 %v2704_v0 }
  0xdd   : > { %2448 = vmatmul.mubr.msk.f32.vlgmr.msra.gmra.mrb[8].mxu1 %vm196_vm2, %v2981_v51 }
  0xde   : > { %2454 = vmatpush3.msk.msra.mxu1 %vm209_vm1, %v2921_v39  ;;  %2329 = vmatmul.mubr.msk.f32.gmra.mrb[6].mxu0 %vm196_vm2, %v2323_v11 }
  0xdf   : > { %2461 = vmatprep.subr.msk.mxu1 %vm209_vm1, %v2962_v46  ;;  %2450 = vmatprep.mubr.msk.f32.mxu1 %vm196_vm2, %v2997_v53 }
  0xe0   : > { %1768 = vmatprep.mubr.f32.mxu0 %v2704_v0 }
  0xe1   : > { %2451 = vmatmul.mubr.msk.f32.gmra.mrb[10].mxu1 %vm196_vm2, %v3010_v55 }
  0xe2   : > { %2341 = vmatmul.mubr.msk.f32.vlgmr.msra.gmra.mrb[0].mxu0 %vm196_vm2, %v2335_v13  ;;  %2455 = vmatprep.mubr.msk.f32.mxu1 %vm196_vm2, %v3020_v57 }
  0xe3   : > { %1774 = vmatprep.mubr.f32.mxu0 %v2704_v0  ;;  %2355 = vmatpush1.msk.msra.mxu0 %vm209_vm1, %v1902_v14 }
  0xe5   : > { %2456 = vmatmul.mubr.msk.f32.vlgmr.msra.gmra.mrb[8].mxu1 %vm196_vm2, %v3038_v62 }
  0xe6   : > { %2462 = vmatpush3.msk.msra.mxu1 %vm209_vm1, %v2962_v46  ;;  %2342 = vmatmul.mubr.msk.f32.gmra.mrb[2].mxu0 %vm196_vm2, %v2336_v15 }
  0xe7   : > { %2469 = vmatprep.subr.msk.mxu1 %vm209_vm1, %v3022_v58  ;;  %2458 = vmatprep.mubr.msk.f32.mxu1 %vm196_vm2, %v2307_v1 }
  0xe8   : > { %1780 = vmatprep.mubr.f32.mxu0 %v2704_v0 }
  0xe9   : > { %2459 = vmatmul.mubr.msk.f32.gmra.mrb[10].mxu1 %vm196_vm2, %v2308_v3 }
  0xea   : > { %2343 = vmatmul.mubr.msk.f32.gmra.mrb[4].mxu0 %vm196_vm2, %v2337_v16  ;;  %2463 = vmatprep.mubr.msk.f32.mxu1 %vm196_vm2, %v2320_v5 }
  0xeb   : > { %1786 = vmatprep.mubr.f32.mxu0 %v2704_v0 }
  0xed   : > { %2464 = vmatmul.mubr.msk.f32.vlgmr.msra.gmra.mrb[8].mxu1 %vm196_vm2, %v2321_v9 }
  0xee   : > { %2344 = vmatmul.mubr.msk.f32.gmra.mrb[6].mxu0 %vm196_vm2, %v2338_v17  ;;  %2470 = vmatpush3.msk.msra.mxu1 %vm209_vm1, %v3022_v58 }
  0xef   : > { %2477 = vmatprep.subr.msk.mxu1 %vm209_vm1, %v3071_v4  ;;  %2466 = vmatprep.mubr.msk.f32.mxu1 %vm196_vm2, %v2322_v10 }
  0xf0   : > { %1986 = vmatprep.mubr.f32.mxu0 %v2704_v0 }
  0xf1   : > { %2467 = vmatmul.mubr.msk.f32.gmra.mrb[10].mxu1 %vm196_vm2, %v2323_v11 }
  0xf2   : > { %2356 = vmatmul.mubr.msk.f32.vlgmr.msra.gmra.mrb[0].mxu0 %vm196_vm2, %v2350_v18  ;;  %2471 = vmatprep.mubr.msk.f32.mxu1 %vm196_vm2, %v2335_v13 }
  0xf3   : > { %1992 = vmatprep.mubr.f32.mxu0 %v2704_v0 }
  0xf5   : > { %2472 = vmatmul.mubr.msk.f32.vlgmr.msra.gmra.mrb[8].mxu1 %vm196_vm2, %v2336_v15 }
  0xf6   : > { %2357 = vmatmul.mubr.msk.f32.gmra.mrb[2].mxu0 %vm196_vm2, %v2351_v19  ;;  %2478 = vmatpush3.msk.msra.mxu1 %vm209_vm1, %v3071_v4 }
  0xf7   : > { %2474 = vmatprep.mubr.msk.f32.mxu1 %vm196_vm2, %v2337_v16  ;;  %1998 = vmatprep.mubr.f32.mxu0 %v2704_v0 }
  0xf9   : > { %2475 = vmatmul.mubr.msk.f32.gmra.mrb[10].mxu1 %vm196_vm2, %v2338_v17 }
  0xfa   : > { %2358 = vmatmul.mubr.msk.f32.gmra.mrb[4].mxu0 %vm196_vm2, %v2352_v20  ;;  %2479 = vmatprep.mubr.msk.f32.mxu1 %vm196_vm2, %v2350_v18 }
  0xfb   : > { %2004 = vmatprep.mubr.f32.mxu0 %v2704_v0 }
  0xfd   : > { %2480 = vmatmul.mubr.msk.f32.vlgmr.msra.gmra.mrb[8].mxu1 %vm196_vm2, %v2351_v19 }
  0xfe   : > { %2359 = vmatmul.mubr.msk.f32.gmra.mrb[6].mxu0 %vm196_vm2, %v2353_v21  ;;  %2482 = vmatprep.mubr.msk.f32.mxu1 %vm196_vm2, %v2352_v20 }
 0x101   : > { %2483 = vmatmul.mubr.msk.f32.gmra.mrb[10].mxu1 %vm196_vm2, %v2353_v21 }
 0x184   : > { %v474_v22 = vpop.f32.mrb[0].mxu1 }
 0x185   : > { %v476_v23 = vpop.f32.mrb[1].mxu1 }
 0x188   : > { %v480_v24 = vpop.f32.mrb[2].mxu1 }
 0x189   : > { %v482_v25 = vpop.f32.mrb[3].mxu1 }
 0x18c   : > { %v486_v26 = vpop.f32.mrb[4].mxu1 }
 0x18d   : > { %v488_v27 = vpop.f32.mrb[5].mxu1 }
 0x19c   : > { %v698_v28 = vpop.f32.mrb[6].mxu1 }
 0x19d   : > { %v700_v0 = vpop.f32.mrb[7].mxu1 }
 0x1c5   : > { %v1988_v29 = vpop.f32.mrb[0].mxu0 }
 0x1c6   : > { %v2487_v31 = vadd.f32 %v1988_v29, %v474_v22  ;;  %v1990_v32 = vpop.f32.mrb[1].mxu0 }
 0x1c7   : > { %v2488_v33 = vadd.f32 %v1990_v32, %v476_v23 }
 0x1c8   : > { %v2128_v35 = vadd.f32 %v2487_v31, %v2111_v30 }
 0x1c9   : > { %v2129_v36 = vadd.f32 %v2488_v33, %v2111_v30  ;;  %v1994_v37 = vpop.f32.mrb[2].mxu0 }
 0x1ca   : > { %2140 = vst [vmem:[%s3200_s29] sm:$0xff] %v2128_v35  ;;  %v2489_v38 = vadd.f32 %v1994_v37, %v480_v24  ;;  %v1996_v39 = vpop.f32.mrb[3].mxu0 }
 0x1cb   : > { %2141 = vst [vmem:[%s3200_s29 + $0x8] sm:$0xff] %v2129_v36  ;;  %v2490_v40 = vadd.f32 %v1996_v39, %v482_v25 }
 0x1cc   : > { %v2131_v41 = vadd.f32 %v2489_v38, %v2116_v34 }
 0x1cd   : > { %v2132_v42 = vadd.f32 %v2490_v40, %v2116_v34  ;;  %v2000_v43 = vpop.f32.mrb[4].mxu0 }
 0x1ce   : > { %2144 = vst [vmem:[%s3200_s29 + $0x18] sm:$0xff] %v2131_v41  ;;  %v2491_v45 = vadd.f32 %v2000_v43, %v486_v26  ;;  %v2002_v46 = vpop.f32.mrb[5].mxu0 }
 0x1cf   : > { %2145 = vst [vmem:[%s3200_s29 + $0x20] sm:$0xff] %v2132_v42  ;;  %v2492_v47 = vadd.f32 %v2002_v46, %v488_v27 }
 0x1d0   : > { %v2134_v48 = vadd.f32 %v2491_v45, %v2121_v44  ;;  %v2481_v49 = vpop.f32.mrb[8].mxu1 }
 0x1d1   : > { %v2135_v51 = vadd.f32 %v2492_v47, %v2121_v44  ;;  %v2006_v52 = vpop.f32.mrb[6].mxu0  ;;  %v2133_v53 = vadd.f32 %v2481_v49, %v2116_v34  ;;  %v2077_v54 = vpop.f32.mrb[9].mxu1 }
 0x1d2   : > { %2147 = vst [vmem:[%s3200_s29 + $0x30] sm:$0xff] %v2134_v48  ;;  %v2493_v55 = vadd.f32 %v2006_v52, %v698_v28  ;;  %v2008_v56 = vpop.f32.mrb[7].mxu0  ;;  %v2130_v57 = vadd.f32 %v2111_v30, %v2077_v54 }
 0x1d3   : > { %2148 = vst [vmem:[%s3200_s29 + $0x38] sm:$0xff] %v2135_v51  ;;  %2146 = vst.msk [vmem:[%s3200_s29 + $0x28] sm:$0xff] %vm2142_vm10, %v2133_v53  ;;  %v2494_v58 = vadd.f32 %v2008_v56, %v700_v0 }
 0x1d4   : > { %2143 = vst.msk [vmem:[%s3200_s29 + $0x10] sm:$0xff] %vm2142_vm10, %v2130_v57  ;;  %v2137_v59 = vadd.f32 %v2493_v55, %v2126_v50  ;;  %v2484_v60 = vpop.f32.mrb[10].mxu1 }
 0x1d5   : > { %v2138_v61 = vadd.f32 %v2494_v58, %v2126_v50  ;;  %v2139_v62 = vadd.f32 %v2484_v60, %v2126_v50  ;;  %v2087_v63 = vpop.f32.mrb[11].mxu1 }
 0x1d6   : > { %2150 = vst [vmem:[%s3200_s29 + $0x48] sm:$0xff] %v2137_v59  ;;  %v2136_v1 = vadd.f32 %v2121_v44, %v2087_v63 }
 0x1d7   : > { %2151 = vst [vmem:[%s3200_s29 + $0x50] sm:$0xff] %v2138_v61  ;;  %2152 = vst.msk [vmem:[%s3200_s29 + $0x58] sm:$0xff] %vm2142_vm10, %v2139_v62 }
 0x1d8   : > { %2149 = vst.msk [vmem:[%s3200_s29 + $0x40] sm:$0xff] %vm2142_vm10, %v2136_v1 }
 0x1d9   : > { %2653 = shalt.err (!%p2650_p3)
}
 0x1da   : > { %s2654_s17 = scalar_lea.hbm %s3217_s6, 1536  ;;  %s2658_s24 = scalar_lea.hbm %s3273_s3, 3072 }
 0x1db   : > { %p2655_p4 = scmp.ne.s32.totalorder %s3217_s6, %s2654_s17  ;;  %p2659_p9 = scmp.lt.u32.totalorder %s3217_s6, %s3273_s3 }
 0x1dc   : > { %p2660_p10 = scmp.lt.u32.totalorder %s2658_s24, %s2654_s17  ;;  %p2662_p12 = scmp.lt.u32.totalorder %s2654_s17, %s3217_s6 }
 0x1dd   : > { %p2656_p7 = pnand %p2655_p4, %p2775_p5 }
 0x1de   : > { %p2661_p11 = por %p2660_p10, %p2659_p9 }
 0x1df   : > { %p2657_p8 = pneg %p2656_p7 }
 0x1e0   : > { %p2663_p13 = por %p2662_p12, %p2661_p11 }
 0x1e2   : > { %p2664_p0 = pnand %p2663_p13, %p2657_p8 }
 0x1e4   : > { %2667 = shalt.err (!%p2664_p0)
}
 0x1e5   : > { %s2715_s27 = smov 384   ;;  %s2716_s28 = smov 24  }
 0x1e6   : > { %2586 = dma.vmem_to_hbm [thread:$0]  (%p2775_p5), %s3220_s4, 1536, %s3217_s6, %s3229_s7, %s2715_s27, %s2715_s27, %s2716_s28  }
 0x1e7 PF: > { %p2592_p1 = scmp.ge.s32.totalorder %s2702_s15, 2  ;;  %s2182_s29 = sand.u32 1, %s2690_s12  }
 0x1e8   : > { %s2183_s30 = scalar_lea.sflag [#allocation3], %s2182_s29 }
 0x1e9   : > { %p2589_p2 = pnand %p2592_p1, %p2779_p6 }
 0x1eb   : > { %2685 = dma.done.wait (!%p2589_p2), %s2183_s30, 1536  }
 0x1ec   : > { %2687 = vsyncadd (!%p2589_p2), %s2183_s30, 4294965760  ;;  %p13_p3 = scmp.ge.s32.totalorder %s2762_s18, 4   ;;  %s3276_s12 = smov %s2694_s13 }
 0x1ed   : > { %s3277_s13 = smov %s2698_s14  ;;  %s3278_s14 = smov %s2773_s21 }
 0x1ee   : > { %s3279_s15 = smov %s2762_s18  ;;  %15 = sbr.rel (!%p13_p3) target bundleno = 3 (0x3), region = 75 }
 0x1f5   :  { %2188 = vsyncpa [#allocation3], 1 }
 0x1f6   :  { %2190 = vsyncpa [#allocation3 + $0x1], 1 }

</bundles_post_ra>
